<compile_context>
chip_gen: v7x
topology: tpu7x:2x2x1
jax: 0.10.0
libtpu: 0.0.40
codegen_flags: <defaults>
</compile_context>

<pallas_src>
import functools

import jax
import jax.numpy as jnp
from jax.experimental import pallas as pl
from jax.experimental.pallas import tpu as pltpu


_VMEM_LIMIT_BYTES = 48 * 1024 * 1024      # > v5e 16 MiB default, < v7x 64 MiB physical
_FUSED_LIMIT_BYTES = 6 * 1024 * 1024      # per-image slab budget for the fused path
_TILE_TARGET_BYTES = 4 * 1024 * 1024      # per-block byte budget for the tiled path


def _pick_hw_tile(hw, c, itemsize, target_bytes):
    """Spatial tile ~= target_bytes/(C*itemsize) lanes, multiple of 128.

    Returns (tile, num_tiles, needs_mask).  Prefers a divisor of hw (no mask);
    otherwise uses cdiv tiling with a masked tail.
    """
    per_lane_bytes = max(1, c * itemsize)
    max_t = max(128, min(hw, (target_bytes // per_lane_bytes) // 128 * 128))
    if hw <= max_t:
        return hw, 1, False
    for t in range(max_t, 127, -128):           # largest 128-aligned divisor
        if hw % t == 0:
            return t, hw // t, False
    t = max_t                                   # no divisor: masked cdiv tiling
    return t, pl.cdiv(hw, t), True


def _stable_sigmoid(s):
    e = jnp.exp(-jnp.abs(s))
    return jnp.where(s >= 0, 1.0 / (1.0 + e), e / (1.0 + e))


# ----------------------------- Pallas kernels -----------------------------

def _fused_kernel(x_ref, w_ref, b_ref, o_ref, *, inv_hw):
    """One image per grid step: pool -> 1x1 conv -> sigmoid -> scale (no HBM round trip)."""
    xf = x_ref[...].astype(jnp.float32)                       # (1, C, HW)
    pool = jnp.sum(xf, axis=-1, keepdims=True) * inv_hw       # (1, C, 1) global mean
    # 1x1 conv in "column" layout: (Cout, Cin) @ (Cin, 1) -> (Cout, 1); once per image.
    s = jnp.dot(w_ref[...], pool[0], preferred_element_type=jnp.float32) + b_ref[...]
    att = _stable_sigmoid(s)                                   # (C, 1)
    o_ref[...] = (xf * att[None]).astype(o_ref.dtype)          # lane-dense store


def _pool_sum_kernel(x_ref, sum_ref, *, hw, thw, use_mask):
    """Per-image channel sums accumulated in the resident (1, C, 1) f32 output block."""
    t = pl.program_id(1)

    @pl.when(t == 0)
    def _():
        sum_ref[...] = jnp.zeros_like(sum_ref)

    x = x_ref[...].astype(jnp.float32)                         # (1, C, thw)
    if use_mask:                                               # mask the padded tail tile
        idx = jax.lax.broadcasted_iota(jnp.int32, x.shape, 2) + t * thw
        x = jnp.where(idx < hw, x, 0.0)
    sum_ref[...] += jnp.sum(x, axis=-1, keepdims=True)


def _scale_kernel(x_ref, att_ref, o_ref):
    """x * attention, lane-dense tiles; att (1, C, 1) broadcasts along the lane axis."""
    o_ref[...] = (x_ref[...].astype(jnp.float32) * att_ref[...]).astype(o_ref.dtype)


# ----------------------------- wrapper -----------------------------

def simple_attention(x_nchw, conv_w, conv_b, *,
                     fused_limit_bytes=_FUSED_LIMIT_BYTES,
                     tile_target_bytes=_TILE_TARGET_BYTES):
    """x: (N, C, H, W) any float dtype; conv_w: (C, C, 1, 1) PyTorch layout; conv_b: (C,)."""
    N, C, H, W = x_nchw.shape
    HW = H * W
    x = x_nchw.reshape(N, C, HW)                       # native dtype; reshape is free
    w2d = conv_w[:, :, 0, 0].astype(jnp.float32)       # (Cout, Cin), tiny
    bcol = conv_b.reshape(C, 1).astype(jnp.float32)    # (C, 1)
    inv_hw = 1.0 / float(HW)
    slab_bytes = C * HW * x.dtype.itemsize

    # ---- fused single-pass path: whole image fits comfortably in VMEM ----
    if slab_bytes <= fused_limit_bytes:
        out = pl.pallas_call(
            functools.partial(_fused_kernel, inv_hw=inv_hw),
            out_shape=jax.ShapeDtypeStruct((N, C, HW), x.dtype),
            grid=(N,),
            in_specs=[
                pl.BlockSpec((1, C, HW), lambda n: (n, 0, 0)),
                pl.BlockSpec((C, C), lambda n: (0, 0)),
                pl.BlockSpec((C, 1), lambda n: (0, 0)),
            ],
            out_specs=pl.BlockSpec((1, C, HW), lambda n: (n, 0, 0)),
            compiler_params=pltpu.CompilerParams(
                dimension_semantics=("parallel",),
                vmem_limit_bytes=_VMEM_LIMIT_BYTES),
        )(x, w2d, bcol)
        return out.reshape(N, C, H, W)

    # ---- two-pass tiled path for large images ----
    thw, t_steps, use_mask = _pick_hw_tile(HW, C, x.dtype.itemsize, tile_target_bytes)

    # pass 1: per-image channel sums.  The spatial axis MUST stay innermost and
    # "arbitrary": the (1, C, 1) output block is a resident accumulator across it.
    sums = pl.pallas_call(
        functools.partial(_pool_sum_kernel, hw=HW, thw=thw, use_mask=use_mask),
        out_shape=jax.ShapeDtypeStruct((N, C, 1), jnp.float32),
        grid=(N, t_steps),
        in_specs=[pl.BlockSpec((1, C, thw), lambda n, t: (n, 0, t))],
        out_specs=pl.BlockSpec((1, C, 1), lambda n, t: (n, 0, 0)),
        compiler_params=pltpu.CompilerParams(
            dimension_semantics=("parallel", "arbitrary"),
            vmem_limit_bytes=_VMEM_LIMIT_BYTES),
    )(x)

    # tiny (N, C) 1x1 conv + sigmoid outside Pallas (keeps w/b out of the hot kernel)
    pool = sums[:, :, 0] * inv_hw                                          # (N, C)
    att = jax.nn.sigmoid(pool @ w2d.T + conv_b.astype(jnp.float32))        # (N, C) f32
    att3 = att.reshape(N, C, 1)

    # pass 2: broadcast scale, byte-budgeted lane-dense tiles, fully parallel
    out = pl.pallas_call(
        _scale_kernel,
        out_shape=jax.ShapeDtypeStruct((N, C, HW), x.dtype),
        grid=(N, t_steps),
        in_specs=[
            pl.BlockSpec((1, C, thw), lambda n, t: (n, 0, t)),
            pl.BlockSpec((1, C, 1), lambda n, t: (n, 0, 0)),
        ],
        out_specs=pl.BlockSpec((1, C, thw), lambda n, t: (n, 0, t)),
        compiler_params=pltpu.CompilerParams(
            dimension_semantics=("parallel", "parallel"),
            vmem_limit_bytes=_VMEM_LIMIT_BYTES),
    )(x, att3)

    return out.reshape(N, C, H, W)


# ----------------------------- demo / self-check -----------------------------

if __name__ == "__main__":
    key = jax.random.PRNGKey(0)
    kx, kw, kb = jax.random.split(key, 3)

    N, C, H, W = 2, 4, 16, 16                              # small shapes (HW = 256)
    x = jax.random.normal(kx, (N, C, H, W), jnp.float32)
    conv_w = jax.random.normal(kw, (C, C, 1, 1), jnp.float32) / jnp.sqrt(float(C))
    conv_b = 0.1 * jax.random.normal(kb, (C,), jnp.float32)

    def ref_forward(xin, w, b):
        pool = jnp.mean(xin.astype(jnp.float32), axis=(2, 3))             # (N, C)
        att = jax.nn.sigmoid(pool @ w[:, :, 0, 0].astype(jnp.float32).T
                             + b.astype(jnp.float32))                     # (N, C)
        return (xin.astype(jnp.float32) * att[:, :, None, None]).astype(xin.dtype)

    ref = ref_forward(x, conv_w, conv_b)

    # fused single-pass path (image fits VMEM)
    out_fused = jax.block_until_ready(simple_attention(x, conv_w, conv_b))
    assert out_fused.shape == (N, C, H, W) and out_fused.dtype == x.dtype
    assert bool(jnp.all(jnp.isfinite(out_fused)))
    assert float(jnp.max(jnp.abs(out_fused - ref))) < 1e-4

    # two-pass tiled path (forced, exercises the large-image code path)
    out_2p = jax.block_until_ready(
        simple_attention(x, conv_w, conv_b, fused_limit_bytes=0))
    assert float(jnp.max(jnp.abs(out_2p - ref))) < 1e-4

    # bf16 stays bf16 end-to-end (no boundary casts; reductions still in f32)
    xb = x.astype(jnp.bfloat16)
    out_bf = jax.block_until_ready(simple_attention(xb, conv_w, conv_b))
    ref_bf = ref_forward(xb, conv_w, conv_b)
    assert out_bf.dtype == jnp.bfloat16
    assert float(jnp.max(jnp.abs(out_bf.astype(jnp.float32)
                                 - ref_bf.astype(jnp.float32)))) < 5e-2

    print("KERNEL_OK")
</pallas_src>

<mosaic_0001>
module attributes {stable_mosaic.version = 11 : i64} {
  func.func @_fused_kernel(%arg0: i32, %arg1: memref<1x4x256xf32, #tpu.memory_space<vmem>>, %arg2: memref<4x4xf32, #tpu.memory_space<vmem>>, %arg3: memref<4x1xf32, #tpu.memory_space<vmem>>, %arg4: memref<1x4x256xf32, #tpu.memory_space<vmem>>) attributes {dimension_semantics = [#tpu.dimension_semantics<parallel>], iteration_bounds = array<i64: 2>, scalar_prefetch = 0 : i64, scratch_operands = 0 : i64, tpu.core_type = #tpu.core_type<tc>, window_params = [{transform_indices = @transform_0, window_bounds = array<i64: 1, 4, 256>}, {pipeline_mode = #tpu.pipeline_mode<synchronous>, transform_indices = @transform_1, window_bounds = array<i64: 4, 4>}, {pipeline_mode = #tpu.pipeline_mode<synchronous>, transform_indices = @transform_2, window_bounds = array<i64: 4, 1>}, {transform_indices = @transform_3, window_bounds = array<i64: 1, 4, 256>}]} {
    %c0 = arith.constant 0 : index
    %c0_0 = arith.constant 0 : index
    %c0_1 = arith.constant 0 : index
    %0 = vector.load %arg1[%c0, %c0_0, %c0_1] : memref<1x4x256xf32, #tpu.memory_space<vmem>>, vector<1x4x256xf32>
    %cst = arith.constant dense<0.000000e+00> : vector<1x4xf32>
    %1 = vector.multi_reduction <add>, %0, %cst [2] : vector<1x4x256xf32> to vector<1x4xf32>
    %2 = vector.shape_cast %1 : vector<1x4xf32> to vector<1x4x1xf32>
    %cst_2 = arith.constant 3.906250e-03 : f32
    %3 = vector.broadcast %cst_2 : f32 to vector<1x4x1xf32>
    %4 = arith.mulf %2, %3 : vector<1x4x1xf32>
    %c0_3 = arith.constant 0 : index
    %c0_4 = arith.constant 0 : index
    %5 = vector.load %arg2[%c0_3, %c0_4] : memref<4x4xf32, #tpu.memory_space<vmem>>, vector<4x4xf32>
    %6 = vector.shape_cast %4 : vector<1x4x1xf32> to vector<4x1xf32>
    %cst_5 = arith.constant dense<0.000000e+00> : vector<4x1xf32>
    %7 = tpu.matmul %5, %6, %cst_5 {dimension_numbers = #tpu.dot_dimension_numbers<[1], [0], [0], [1], [0, 0, 1, 1], [], []>} : vector<4x4xf32>, vector<4x1xf32>, vector<4x1xf32> -> vector<4x1xf32>
    %c0_6 = arith.constant 0 : index
    %c0_7 = arith.constant 0 : index
    %8 = vector.load %arg3[%c0_6, %c0_7] : memref<4x1xf32, #tpu.memory_space<vmem>>, vector<4x1xf32>
    %9 = arith.addf %7, %8 : vector<4x1xf32>
    %10 = math.absf %9 : vector<4x1xf32>
    %cst_8 = arith.constant 0.000000e+00 : f32
    %11 = vector.broadcast %cst_8 : f32 to vector<4x1xf32>
    %12 = arith.subf %11, %10 : vector<4x1xf32>
    %13 = math.exp %12 : vector<4x1xf32>
    %cst_9 = arith.constant 0.000000e+00 : f32
    %14 = vector.broadcast %cst_9 : f32 to vector<4x1xf32>
    %15 = arith.cmpf oge, %9, %14 : vector<4x1xf32>
    %cst_10 = arith.constant 1.000000e+00 : f32
    %16 = vector.broadcast %cst_10 : f32 to vector<4x1xf32>
    %17 = arith.addf %16, %13 : vector<4x1xf32>
    %cst_11 = arith.constant 1.000000e+00 : f32
    %18 = vector.broadcast %cst_11 : f32 to vector<4x1xf32>
    %19 = arith.divf %18, %17 : vector<4x1xf32>
    %cst_12 = arith.constant 1.000000e+00 : f32
    %20 = vector.broadcast %cst_12 : f32 to vector<4x1xf32>
    %21 = arith.addf %20, %13 : vector<4x1xf32>
    %22 = arith.divf %13, %21 : vector<4x1xf32>
    %23 = arith.select %15, %19, %22 : vector<4x1xi1>, vector<4x1xf32>
    %24 = vector.shape_cast %23 : vector<4x1xf32> to vector<1x4x1xf32>
    %25 = vector.broadcast %24 : vector<1x4x1xf32> to vector<1x4x256xf32>
    %26 = arith.mulf %0, %25 : vector<1x4x256xf32>
    %c0_13 = arith.constant 0 : index
    %c0_14 = arith.constant 0 : index
    %c0_15 = arith.constant 0 : index
    %27 = vector.load %arg4[%c0_13, %c0_14, %c0_15] : memref<1x4x256xf32, #tpu.memory_space<vmem>>, vector<1x4x256xf32>
    tpu.vector_store %arg4[%c0_13, %c0_14, %c0_15], %26 {strides = array<i32>} : memref<1x4x256xf32, #tpu.memory_space<vmem>>, vector<1x4x256xf32>,
    return
  }
  func.func @transform_0(%arg0: i32) -> (i32, i32, i32) {
    %c0_i32 = arith.constant 0 : i32
    %c0_i32_0 = arith.constant 0 : i32
    %c0_i32_1 = arith.constant 0 : i32
    return %arg0, %c0_i32, %c0_i32_0 : i32, i32, i32
  }
  func.func @transform_1(%arg0: i32) -> (i32, i32) {
    %c0_i32 = arith.constant 0 : i32
    %c0_i32_0 = arith.constant 0 : i32
    %c0_i32_1 = arith.constant 0 : i32
    return %c0_i32, %c0_i32_0 : i32, i32
  }
  func.func @transform_2(%arg0: i32) -> (i32, i32) {
    %c0_i32 = arith.constant 0 : i32
    %c0_i32_0 = arith.constant 0 : i32
    %c0_i32_1 = arith.constant 0 : i32
    return %c0_i32, %c0_i32_0 : i32, i32
  }
  func.func @transform_3(%arg0: i32) -> (i32, i32, i32) {
    %c0_i32 = arith.constant 0 : i32
    %c0_i32_0 = arith.constant 0 : i32
    %c0_i32_1 = arith.constant 0 : i32
    return %arg0, %c0_i32, %c0_i32_0 : i32, i32, i32
  }
}

</mosaic_0001>

<bundles_post_ra>
// kernel: tpu_custom_call.1
= control target key start
LH: loop header
LB: loop body
LE: loop exit
PB: predicated region body
PF: predicated region fallthrough
CT: control target
= control target key end

     0   :  { %8 = vsyncpa [#allocation3], 0  ;;  %s762_s0 = inlined_call_operand.hbm [shape: f32[2,4,256], index: 0, kind: input, shape index: {}]   ;;  %s763_s1 = inlined_call_operand.vmem [shape: f32[4,4], index: 1, kind: input, shape index: {}]   ;;  %s764_s2 = inlined_call_operand.vmem [shape: f32[4,1], index: 2, kind: input, shape index: {}]   ;;  %s765_s3 = inlined_call_operand.hbm [shape: f32[2,4,256], index: 3, kind: output, shape index: {}]  }
   0x1   :  { %10 = vsyncpa [#allocation3 + $0x1], 0 }
   0x2   :  { %11 = vsyncpa [#allocation4], 0 }
   0x3   :  { %13 = vsyncpa [#allocation4 + $0x1], 0  ;;  %s591_s12 = smov 0   ;;  %s593_s13 = smov 0  }
   0x4   :  { %s595_s14 = smov 0   ;;  %s597_s15 = smov 0  }
   0x5 LB: > { %s612_s16 = sadd.s32 4294967295, %s563_s15   ;;  %s386_s17 = sadd.s32 4294967294, %s563_s15   ;;  %s563_s15 = sphi %s597_s15, %s780_s15   ;;  %s559_s14 = sphi %s595_s14, %s779_s14   ;;  %s555_s13 = sphi %s593_s13, %s778_s13   ;;  %s551_s12 = sphi %s591_s12, %s777_s12  }
   0x6   : > { %s616_s18 = sadd.s32 1, %s563_s15   ;;  %s26_s19 = sadd.s32 1, %s559_s14 }
   0x7   : > { %s23_s20 = ssub.s32 %s563_s15, %s616_s18  ;;  %p33_p0 = scmp.ne.s32.totalorder %s559_s14, %s555_s13 }
   0x8   : > { %p24_p1 = scmp.eq.s32.totalorder %s23_s20, 0  ;;  %p34_p2 = scmp.eq.s32.totalorder %s563_s15, 0 }
   0x9   : > { %p39_p3 = scmp.ne.s32.totalorder %s555_s13, %s551_s12  ;;  %p40_p4 = scmp.eq.s32.totalorder %s612_s16, 0 }
   0xa   : > { %s628_s21 = scalar_select %p24_p1, %s559_s14, %s26_s19  }
   0xb   : > { %p630_p5 = por %p34_p2, %p33_p0  ;;  %p634_p6 = por %p40_p4, %p39_p3 }
   0xc   : > { %p105_p7 = scmp.eq.s32.totalorder %s612_s16, 1  ;;  %p111_p8 = scmp.eq.s32.totalorder %s386_s17, 1 }
   0xd   : > { %p423_p10 = scmp.lt.s32.totalorder %s563_s15, 2  ;;  %s137_s26 = sand.u32 1, %s559_s14  }
   0xe   : > { %p641_p11 = por %p105_p7, %p33_p0  ;;  %p645_p12 = por %p111_p8, %p39_p3 }
   0xf   : > { %s402_s27 = sshll.u32 %s563_s15, 7  ;;  %s389_s28 = sshll.u32 %s137_s26, 3 }
  0x10   : > { %s769_s24 = scalar_select %p641_p11, 1, 0 }
  0x11   : > { %s770_s25 = scalar_select %p645_p12, 1, 0 }
  0x12   : > { %s654_s4 = scalar_lea.hbm %s762_s0, %s402_s27  ;;  %s141_s5 = scalar_lea.vmem [#allocation2], %s389_s28 }
  0x13   : > { %s149_s6 = sshll.u32 %s141_s5, 4  ;;  %p658_p13 = pnand %p423_p10, %p630_p5  ;;  %s662_s6 = int_to_ptr.vmem [resolvable:$true] %s149_s6 }
  0x14   : > { %s138_s8 = scalar_lea.sflag [#allocation3], %s137_s26  ;;  %s467_s9 = scalar_lea.hbm %s654_s4, 128 }
  0x15   : > { %p468_p2 = scmp.ne.s32.totalorder %s654_s4, %s467_s9  ;;  %p469_p3 = pneg %p658_p13 }
  0x16   : > { %s472_s17 = scalar_lea.hbm %s762_s0, 256  ;;  %p473_p5 = scmp.lt.u32.totalorder %s654_s4, %s762_s0 }
  0x17   : > { %p470_p4 = pnand %p469_p3, %p468_p2  ;;  %p474_p8 = scmp.lt.u32.totalorder %s472_s17, %s467_s9 }
  0x18   : > { %p476_p9 = scmp.lt.u32.totalorder %s467_s9, %s654_s4 }
  0x19   : > { %p471_p7 = pneg %p470_p4  ;;  %p475_p10 = por %p474_p8, %p473_p5 }
  0x1b   : > { %p477_p0 = por %p476_p9, %p475_p10 }
  0x1d   : > { %p478_p1 = pnand %p477_p0, %p471_p7 }
  0x1f   : > { %481 = shalt.err (!%p478_p1)
}
  0x20   : > { %s482_s22 = scalar_lea.vmem %s662_s6, 128  ;;  %s565_s26 = smov [#allocation2]  }
  0x21   : > { %p483_p2 = scmp.ne.s32.totalorder %s662_s6, %s482_s22  ;;  %s487_s27 = sshll.u32 %s565_s26, 4  ;;  %s488_s27 = int_to_ptr.vmem [resolvable:$false] %s487_s27 }
  0x22   : > { %s489_s28 = scalar_lea.vmem %s488_s27, 256  ;;  %p490_p11 = scmp.lt.s32.totalorder %s662_s6, %s488_s27 }
  0x23   : > { %p485_p4 = pnand %p483_p2, %p469_p3  ;;  %p491_p5 = scmp.lt.s32.totalorder %s489_s28, %s482_s22 }
  0x25   : > { %p486_p12 = pneg %p485_p4  ;;  %p492_p8 = por %p491_p5, %p490_p11 }
  0x27   : > { %p493_p9 = pnand %p492_p8, %p486_p12 }
  0x29   : > { %496 = shalt.err (!%p493_p9)
}
  0x2a   : > { %418 = dma.hbm_to_vmem [thread:$0]  (!%p658_p13), %s654_s4, 128, %s662_s6, %s138_s8  }
  0x2b   : > { %p772_p0 = scmp.lt.s32.totalorder %s563_s15, 3  ;;  %p773_p1 = scmp.ge.s32.totalorder %s563_s15, 1 }
  0x2d   : > { %p155_p3 = pnand %p773_p1, %p772_p0 }
  0x2e   : > { %s696_s29 = sand.u32 (!%p155_p3), 1, %s555_s13  }
  0x2f   : > { %158 = sbr.rel (%p155_p3) target bundleno = 599 (0x257), region = 32  ;;  %s393_s30 = sshll.u32 (!%p155_p3), %s696_s29, 3 }
  0x30   : > { %s161_s5 = scalar_lea.sflag (!%p155_p3), [#allocation3], %s696_s29  ;;  %s164_s7 = scalar_lea.vmem (!%p155_p3), [#allocation2], %s393_s30 }
  0x36   : > { %542 = dma.done.wait (%p634_p6), %s161_s5, 128  }
  0x37   : > { %544 = vsyncadd (%p634_p6), %s161_s5, 4294967168  ;;  %vm191_vm0 = vcmask 1043456   ;;  %v187_v0 = vld [vmem:[%s164_s7] sm:$0xff]  ;;  %v566_v5 = vmov 0.0   ;;  %vm567_vm1 = vmmov 0   ;;  %vm200_vm2 = vcmask 31744  }
  0x38   : > { %v189_v1 = vcombine.high %v187_v0, %v187_v0  ;;  %v192_v2 = vsel %vm191_vm0, %v187_v0, 0.0  ;;  %406 = vmatprep.subr.mxu0 %v566_v5  ;;  %408 = vmatprep.mubr.msk.f32.mxu0 %vm567_vm1, %v566_v5  ;;  %v198_v8 = vld [vmem:[%s763_s1] sm:$0xf]  ;;  %v568_v9 = vmov 0   ;;  %v569_v22 = vmov 839922192  }
  0x39   : > { %461 = vset.pattern.permute.xlu0 %v568_v9  ;;  %v199_v10 = vld [vmem:[%s764_s2] sm:$0xf]  ;;  %v292_v23 = vunpack.c.l.s4 %v569_v22  ;;  %v294_v24 = vlaneseq  ;;  %s403_s9 = sshll.u32 %s612_s16, 7  ;;  %s186_s10 = scalar_lea.vmem [#allocation5], %s393_s30 }
  0x3a   : > { %v193_v3 = vsel %vm191_vm0, %v189_v1, 0.0  ;;  %s316_s11 = sshll.u32 %s186_s10, 4  ;;  %s718_s20 = scalar_lea.hbm %s765_s3, %s403_s9  ;;  %s720_s11 = int_to_ptr.vmem [resolvable:$true] %s316_s11 }
  0x3b   : > { %v194_v4 = vadd.f32 %v193_v3, %v192_v2  ;;  %v293_v25 = vunpack.c.0.s8 %v292_v23  ;;  %v295_v26 = vshrl.u32 %v294_v24, 7  ;;  %s302_s22 = scalar_lea.sflag [#allocation4], %s696_s29  ;;  %s497_s26 = scalar_lea.vmem %s720_s11, 128 }
  0x3c   : > { %p498_p6 = scmp.ne.s32.totalorder %s720_s11, %s497_s26  ;;  %p774_p11 = scmp.ne.s32.totalorder %s769_s24, 0 }
  0x3d   : > { %195 = vadd.xlane.f32.xlu0 %v194_v4  ;;  %v296_v27 = vsub.s32 %v293_v25, %v295_v26  ;;  %s570_s16 = smov [#allocation5]  }
  0x3e   : > { %p499_p12 = pnand %p498_p6, %p774_p11  ;;  %s501_s27 = sshll.u32 %s570_s16, 4  ;;  %s502_s27 = int_to_ptr.vmem [resolvable:$false] %s501_s27 }
  0x3f   : > { %s503_s28 = scalar_lea.vmem %s502_s27, 256  ;;  %p504_p7 = scmp.lt.s32.totalorder %s720_s11, %s502_s27 }
  0x40   : > { %p500_p13 = pneg %p499_p12  ;;  %p505_p10 = scmp.lt.s32.totalorder %s503_s28, %s497_s26 }
  0x42   : > { %p506_p2 = por %p505_p10, %p504_p7 }
  0x44   : > { %p507_p4 = pnand %p506_p2, %p500_p13 }
  0xca   : > { %v196_v6 = vpop.xlane.xlu0 %195 }
  0xcb   : > { %v197_v7 = vmul.f32 0.00390625, %v196_v6 }
  0xcd   : > { %407 = vmatpush3.msk.msra.mxu0 %vm191_vm0, %v197_v7 }
  0xce   : > { %409 = vmatmul.mubr.msk.f32.vlgmr.msra.gmra.mrb[0].mxu0 %vm200_vm2, %v198_v8 }
 0x1a1   : > { %v273_v11 = vpop.f32.mrb[0].mxu0 }
 0x1a2   : > { %v274_v12 = vadd.f32 %v273_v11, %v199_v10  ;;  %v410_v13 = vpop.f32.mrb[1].mxu0 }
 0x1a4   : > { %v277_v14 = vand.u32 2147483647, %v274_v12  ;;  %vm281_vm3 = vcmp.ge.f32.partialorder %v274_v12, 0.0 }
 0x1a6   : > { %v278_v15 = vsub.f32 0.0, %v277_v14 }
 0x1a8   : > { %v279_v16 = vmul.f32 1.442695, %v278_v15 }
 0x1aa   : > { %463 = vpow2.f32 %v279_v16 }
 0x1b4   : > { %v464_v17 = vpop.eup %463 }
 0x1b5   : > { %v282_v18 = vadd.f32 1.0, %v464_v17 }
 0x1b7   : > { %465 = vrcp.f32 %v282_v18 }
 0x1c1   : > { %v466_v19 = vpop.eup %465 }
 0x1c2   : > { %v285_v20 = vmul.f32 %v466_v19, %v464_v17 }
 0x1c4   : > { %v286_v21 = vsel %vm281_vm3, %v466_v19, %v285_v20 }
 0x1c5   : > { %289 = vperm.xlu0 %461, %v286_v21  }
 0x244   : > { %v290_v28 = vpop.permute.xlu0 %289 }
 0x245   : > { %v297_v29 = vrot.slane %v290_v28, %v296_v27 }
 0x247   : > { %v299_v30 = vmul.f32 %v297_v29, %v187_v0 }
 0x249   : > { %300 = vst [vmem:[%s186_s10] sm:$0xff] %v299_v30 }
 0x24a   : > { %510 = shalt.err (!%p507_p4)
}
 0x24b   : > { %s511_s29 = scalar_lea.hbm %s718_s20, 128  ;;  %s515_s7 = scalar_lea.hbm %s765_s3, 256 }
 0x24c   : > { %p512_p5 = scmp.ne.s32.totalorder %s718_s20, %s511_s29  ;;  %p516_p0 = scmp.lt.u32.totalorder %s718_s20, %s765_s3 }
 0x24d   : > { %p517_p1 = scmp.lt.u32.totalorder %s515_s7, %s511_s29  ;;  %p519_p6 = scmp.lt.u32.totalorder %s511_s29, %s718_s20 }
 0x24e   : > { %p513_p8 = pnand %p512_p5, %p774_p11 }
 0x24f   : > { %p518_p3 = por %p517_p1, %p516_p0 }
 0x250   : > { %p514_p9 = pneg %p513_p8 }
 0x251   : > { %p520_p12 = por %p519_p6, %p518_p3 }
 0x253   : > { %p521_p13 = pnand %p520_p12, %p514_p9 }
 0x255   : > { %524 = shalt.err (!%p521_p13)
}
 0x256   : > { %413 = dma.vmem_to_hbm [thread:$0]  (%p774_p11), %s720_s11, 128, %s718_s20, %s302_s22  }
 0x257 PF: > { %s328_s23 = sand.u32 1, %s551_s12   ;;  %p775_p7 = scmp.ne.s32.totalorder %s770_s25, 0 }
 0x258   : > { %p776_p10 = scmp.ge.s32.totalorder %s563_s15, 2  ;;  %s329_s8 = scalar_lea.sflag [#allocation4], %s328_s23 }
 0x25a   : > { %p420_p2 = pnand %p776_p10, %p775_p7 }
 0x25c   : > { %546 = dma.done.wait (!%p420_p2), %s329_s8, 128  }
 0x25d   : > { %548 = vsyncadd (!%p420_p2), %s329_s8, 4294967168  ;;  %p16_p4 = scmp.ge.s32.totalorder %s616_s18, 4   ;;  %s777_s12 = smov %s555_s13 }
 0x25e   : > { %s778_s13 = smov %s559_s14  ;;  %s779_s14 = smov %s628_s21 }
 0x25f   : > { %s780_s15 = smov %s616_s18  ;;  %18 = sbr.rel (!%p16_p4) target bundleno = 5 (0x5), region = 77 }
 0x266   :  { %334 = vsyncpa [#allocation3], 1 }
 0x267   :  { %336 = vsyncpa [#allocation3 + $0x1], 1 }
 0x268   :  { %337 = vsyncpa [#allocation4], 1 }
 0x269   :  { %339 = vsyncpa [#allocation4 + $0x1], 1 }

</bundles_post_ra>
